<compile_context>
chip_gen: v7x
topology: tpu7x:2x2x1
jax: 0.10.0
libtpu: 0.0.40
codegen_flags: <defaults>
</compile_context>

<pallas_src>
import jax
import jax.numpy as jnp
import numpy as np
from jax.experimental import pallas as pl
from jax.experimental.pallas import tpu as pltpu


# --------------------------- kernel helpers --------------------------------- #

def _dot_w(h, w_ref, idx):
    """(M,128) @ packed weight block idx -> f32 (M,128). Static slab slice."""
    w = w_ref[pl.ds(idx * 128, 128), :]
    return jnp.dot(h.astype(w.dtype), w, preferred_element_type=jnp.float32)


def _lin(h, w_ref, b_ref, idx, relu):
    y = _dot_w(h, w_ref, idx) + b_ref[pl.ds(idx, 1), :]      # f32 epilogue
    return jnp.maximum(y, 0.0) if relu else y


def _decoder(h, embp, w_ref, b_ref):
    # decoder layer 0: h @ dw0[:, :64].T + (emb @ dw0[:, 64:].T) + db0
    d = jnp.maximum(_dot_w(h, w_ref, 3) + embp + b_ref[pl.ds(3, 1), :], 0.0)
    d = _lin(d, w_ref, b_ref, 4, relu=True)
    return _lin(d, w_ref, b_ref, 5, relu=False)


# --------------------------- Pallas kernels --------------------------------- #

def unet_kernel_nosigma(x_ref, embp_ref, w_ref, b_ref, o_ref):
    h = _lin(x_ref[...], w_ref, b_ref, 0, True)
    h = _lin(h, w_ref, b_ref, 1, True)
    h = _lin(h, w_ref, b_ref, 2, False)
    o_ref[...] = _decoder(h, embp_ref[...], w_ref, b_ref).astype(o_ref.dtype)


def unet_kernel_sigma(x_ref, sig_ref, embp_ref, w_ref, b_ref, o_ref):
    bm = x_ref.shape[0]
    # Single encoder pass over [x; sigma] stacked on sublanes (2*bm rows).
    hs = jnp.concatenate([x_ref[...], sig_ref[...]], axis=0)
    hs = _lin(hs, w_ref, b_ref, 0, True)
    hs = _lin(hs, w_ref, b_ref, 1, True)
    hs = _lin(hs, w_ref, b_ref, 2, False)
    h = hs[:bm] + hs[bm:]                                    # encoder(x)+encoder(sigma)
    o_ref[...] = _decoder(h, embp_ref[...], w_ref, b_ref).astype(o_ref.dtype)


# --------------------------- packing helpers -------------------------------- #

def _round_up(n, m):
    return ((n + m - 1) // m) * m


def _pad2d(a, rows, cols):
    return jnp.pad(a, ((0, rows - a.shape[0]), (0, cols - a.shape[1])))


def _pack_weights(params, compute_dtype):
    """One (6*128, 128) weight slab + one (8, 128) f32 bias slab."""
    mats = [
        params["ew0"].T,            # (in_dim, 64)
        params["ew1"].T,            # (64, 64)
        params["ew2"].T,            # (64, 64)
        params["dw0"][:, :64].T,    # (64, 128)   x-part of decoder layer 0
        params["dw1"].T,            # (128, 128)
        params["dw2"].T,            # (128, out_dim)
    ]
    w_slab = jnp.concatenate([_pad2d(m, 128, 128) for m in mats], axis=0)
    w_slab = w_slab.astype(compute_dtype)

    biases = [params["eb0"], params["eb1"], params["eb2"],
              params["db0"], params["db1"], params["db2"]]
    b_slab = jnp.stack([jnp.pad(b, (0, 128 - b.shape[0])) for b in biases], axis=0)
    b_slab = jnp.pad(b_slab, ((0, 2), (0, 0))).astype(jnp.float32)   # (8, 128)
    return w_slab, b_slab


# --------------------------- wrapper ----------------------------------------- #

def unet_forward(params, x, timestep, enc_sigma=None, compute_dtype=jnp.float32):
    """Pallas implementation of UNet.forward (see torch module)."""
    B, in_dim = x.shape
    out_dim = params["dw2"].shape[0]
    assert in_dim <= 128 and out_dim <= 128 and params["ew0"].shape[0] == 64

    w_slab, b_slab = _pack_weights(params, compute_dtype)

    # Fold the embedding gather + decoder-layer-0 embedding columns into a tiny
    # precomputed table (done once, outside the kernel, in plain JAX).
    emb_tbl = jnp.dot(params["emb"], params["dw0"][:, 64:].T)    # (T, 128) f32
    emb_proj = jnp.take(emb_tbl, timestep, axis=0)               # (B, 128) f32

    # Batch tiling: bm is a multiple of 8, capped at 512 (fits v7x 64 MiB VMEM
    # with large headroom); batch is zero-padded to a multiple of bm.
    bm = min(512, _round_up(B, 8))
    Bp = _round_up(B, bm)
    nblk = Bp // bm

    xp = _pad2d(x, Bp, 128).astype(compute_dtype)
    ep = _pad2d(emb_proj, Bp, 128)

    row_spec = pl.BlockSpec((bm, 128), lambda i: (i, 0))
    pin_w = pl.BlockSpec(w_slab.shape, lambda i: (0, 0))
    pin_b = pl.BlockSpec(b_slab.shape, lambda i: (0, 0))
    cparams = pltpu.CompilerParams(
        dimension_semantics=("parallel",),
        vmem_limit_bytes=32 * 1024 * 1024,
    )
    out_shape = jax.ShapeDtypeStruct((Bp, 128), jnp.float32)

    if enc_sigma is None:
        out_full = pl.pallas_call(
            unet_kernel_nosigma,
            out_shape=out_shape,
            grid=(nblk,),
            in_specs=[row_spec, row_spec, pin_w, pin_b],
            out_specs=row_spec,
            compiler_params=cparams,
        )(xp, ep, w_slab, b_slab)
    else:
        sp = _pad2d(enc_sigma, Bp, 128).astype(compute_dtype)
        out_full = pl.pallas_call(
            unet_kernel_sigma,
            out_shape=out_shape,
            grid=(nblk,),
            in_specs=[row_spec, row_spec, row_spec, pin_w, pin_b],
            out_specs=row_spec,
            compiler_params=cparams,
        )(xp, sp, ep, w_slab, b_slab)

    return out_full[:B, :out_dim]


# --------------------------- params & reference ------------------------------ #

def init_params(key, in_dim, out_dim, num_timesteps, embedding_dim):
    """Deterministic init mimicking PyTorch defaults (uniform +/- 1/sqrt(fan_in))."""
    def linear(k, fan_in, fan_out):
        kw, kb = jax.random.split(k)
        bound = 1.0 / np.sqrt(fan_in)
        w = jax.random.uniform(kw, (fan_out, fan_in), jnp.float32, -bound, bound)
        b = jax.random.uniform(kb, (fan_out,), jnp.float32, -bound, bound)
        return w, b

    keys = jax.random.split(key, 7)
    p = {}
    p["ew0"], p["eb0"] = linear(keys[0], in_dim, 64)
    p["ew1"], p["eb1"] = linear(keys[1], 64, 64)
    p["ew2"], p["eb2"] = linear(keys[2], 64, 64)
    p["dw0"], p["db0"] = linear(keys[3], 64 + embedding_dim, 128)
    p["dw1"], p["db1"] = linear(keys[4], 128, 128)
    p["dw2"], p["db2"] = linear(keys[5], 128, out_dim)
    p["emb"] = jax.random.normal(keys[6], (num_timesteps, embedding_dim), jnp.float32)
    return p


def unet_ref(params, x, timestep, enc_sigma=None):
    """Pure-JAX reference matching the torch forward exactly."""
    def enc(h):
        h = jax.nn.relu(h @ params["ew0"].T + params["eb0"])
        h = jax.nn.relu(h @ params["ew1"].T + params["eb1"])
        return h @ params["ew2"].T + params["eb2"]

    h = enc(x)
    if enc_sigma is not None:
        h = h + enc(enc_sigma)
    emb = params["emb"][timestep]
    z = jnp.concatenate([h, emb], axis=1)
    z = jax.nn.relu(z @ params["dw0"].T + params["db0"])
    z = jax.nn.relu(z @ params["dw1"].T + params["db1"])
    return z @ params["dw2"].T + params["db2"]


# --------------------------- main --------------------------------------------- #

if __name__ == "__main__":
    in_dim, out_dim = 4, 4
    num_timesteps, embedding_dim = 10, 2
    B = 8

    key = jax.random.PRNGKey(0)
    kp, kx, ks, kt = jax.random.split(key, 4)
    params = init_params(kp, in_dim, out_dim, num_timesteps, embedding_dim)

    x = jax.random.normal(kx, (B, in_dim), jnp.float32)
    enc_sigma = jax.random.normal(ks, (B, in_dim), jnp.float32)
    timestep = jax.random.randint(kt, (B,), 0, num_timesteps)

    # with enc_sigma (f32 compute path)
    out = unet_forward(params, x, timestep, enc_sigma)
    jax.block_until_ready(out)
    ref = unet_ref(params, x, timestep, enc_sigma)
    np.testing.assert_allclose(np.asarray(out), np.asarray(ref), rtol=1e-5, atol=1e-5)

    # without enc_sigma (the `None` branch -> specialized kernel)
    out2 = unet_forward(params, x, timestep, None)
    jax.block_until_ready(out2)
    ref2 = unet_ref(params, x, timestep, None)
    np.testing.assert_allclose(np.asarray(out2), np.asarray(ref2), rtol=1e-5, atol=1e-5)

    # non-multiple-of-8 batch to exercise padding path
    out3 = unet_forward(params, x[:5], timestep[:5], enc_sigma[:5])
    jax.block_until_ready(out3)
    ref3 = unet_ref(params, x[:5], timestep[:5], enc_sigma[:5])
    np.testing.assert_allclose(np.asarray(out3), np.asarray(ref3), rtol=1e-5, atol=1e-5)

    # bf16 MXU path (v6e/v7x): f32 accumulation, f32 epilogue, looser tolerance
    out4 = unet_forward(params, x, timestep, enc_sigma, compute_dtype=jnp.bfloat16)
    jax.block_until_ready(out4)
    np.testing.assert_allclose(np.asarray(out4), np.asarray(ref), rtol=1e-1, atol=1e-1)

    print("KERNEL_OK")
</pallas_src>

<mosaic_0001>
module attributes {stable_mosaic.version = 11 : i64} {
  func.func @unet_kernel_sigma(%arg0: i32, %arg1: memref<8x128xf32, #tpu.memory_space<vmem>>, %arg2: memref<8x128xf32, #tpu.memory_space<vmem>>, %arg3: memref<8x128xf32, #tpu.memory_space<vmem>>, %arg4: memref<768x128xf32, #tpu.memory_space<vmem>>, %arg5: memref<8x128xf32, #tpu.memory_space<vmem>>, %arg6: memref<8x128xf32, #tpu.memory_space<vmem>>) attributes {dimension_semantics = [#tpu.dimension_semantics<parallel>], iteration_bounds = array<i64: 1>, scalar_prefetch = 0 : i64, scratch_operands = 0 : i64, tpu.core_type = #tpu.core_type<tc>, window_params = [{transform_indices = @transform_0, window_bounds = array<i64: 8, 128>}, {transform_indices = @transform_1, window_bounds = array<i64: 8, 128>}, {transform_indices = @transform_2, window_bounds = array<i64: 8, 128>}, {pipeline_mode = #tpu.pipeline_mode<synchronous>, transform_indices = @transform_3, window_bounds = array<i64: 768, 128>}, {pipeline_mode = #tpu.pipeline_mode<synchronous>, transform_indices = @transform_4, window_bounds = array<i64: 8, 128>}, {transform_indices = @transform_5, window_bounds = array<i64: 8, 128>}]} {
    %c0 = arith.constant 0 : index
    %c0_0 = arith.constant 0 : index
    %0 = vector.load %arg1[%c0, %c0_0] : memref<8x128xf32, #tpu.memory_space<vmem>>, vector<8x128xf32>
    %c0_1 = arith.constant 0 : index
    %c0_2 = arith.constant 0 : index
    %1 = vector.load %arg2[%c0_1, %c0_2] : memref<8x128xf32, #tpu.memory_space<vmem>>, vector<8x128xf32>
    %2 = tpu.concatenate %0, %1 in 0 : vector<8x128xf32>, vector<8x128xf32> -> vector<16x128xf32>
    %c0_3 = arith.constant 0 : index
    %c0_4 = arith.constant 0 : index
    %3 = vector.load %arg4[%c0_3, %c0_4] : memref<768x128xf32, #tpu.memory_space<vmem>>, vector<128x128xf32>
    %cst = arith.constant dense<0.000000e+00> : vector<16x128xf32>
    %4 = tpu.matmul %2, %3, %cst {dimension_numbers = #tpu.dot_dimension_numbers<[1], [0], [0], [1], [0, 0, 1, 1], [], []>} : vector<16x128xf32>, vector<128x128xf32>, vector<16x128xf32> -> vector<16x128xf32>
    %c0_5 = arith.constant 0 : index
    %c0_6 = arith.constant 0 : index
    %5 = vector.load %arg5[%c0_5, %c0_6] : memref<8x128xf32, #tpu.memory_space<vmem>>, vector<1x128xf32>
    %6 = vector.broadcast %5 : vector<1x128xf32> to vector<16x128xf32>
    %7 = arith.addf %4, %6 : vector<16x128xf32>
    %cst_7 = arith.constant 0.000000e+00 : f32
    %8 = vector.broadcast %cst_7 : f32 to vector<16x128xf32>
    %9 = arith.maximumf %7, %8 : vector<16x128xf32>
    %c128 = arith.constant 128 : index
    %c0_8 = arith.constant 0 : index
    %10 = vector.load %arg4[%c128, %c0_8] : memref<768x128xf32, #tpu.memory_space<vmem>>, vector<128x128xf32>
    %cst_9 = arith.constant dense<0.000000e+00> : vector<16x128xf32>
    %11 = tpu.matmul %9, %10, %cst_9 {dimension_numbers = #tpu.dot_dimension_numbers<[1], [0], [0], [1], [0, 0, 1, 1], [], []>} : vector<16x128xf32>, vector<128x128xf32>, vector<16x128xf32> -> vector<16x128xf32>
    %c1 = arith.constant 1 : index
    %c0_10 = arith.constant 0 : index
    %12 = vector.load %arg5[%c1, %c0_10] : memref<8x128xf32, #tpu.memory_space<vmem>>, vector<1x128xf32>
    %13 = vector.broadcast %12 : vector<1x128xf32> to vector<16x128xf32>
    %14 = arith.addf %11, %13 : vector<16x128xf32>
    %cst_11 = arith.constant 0.000000e+00 : f32
    %15 = vector.broadcast %cst_11 : f32 to vector<16x128xf32>
    %16 = arith.maximumf %14, %15 : vector<16x128xf32>
    %c256 = arith.constant 256 : index
    %c0_12 = arith.constant 0 : index
    %17 = vector.load %arg4[%c256, %c0_12] : memref<768x128xf32, #tpu.memory_space<vmem>>, vector<128x128xf32>
    %cst_13 = arith.constant dense<0.000000e+00> : vector<16x128xf32>
    %18 = tpu.matmul %16, %17, %cst_13 {dimension_numbers = #tpu.dot_dimension_numbers<[1], [0], [0], [1], [0, 0, 1, 1], [], []>} : vector<16x128xf32>, vector<128x128xf32>, vector<16x128xf32> -> vector<16x128xf32>
    %c2 = arith.constant 2 : index
    %c0_14 = arith.constant 0 : index
    %19 = vector.load %arg5[%c2, %c0_14] : memref<8x128xf32, #tpu.memory_space<vmem>>, vector<1x128xf32>
    %20 = vector.broadcast %19 : vector<1x128xf32> to vector<16x128xf32>
    %21 = arith.addf %18, %20 : vector<16x128xf32>
    %22 = vector.extract_strided_slice %21 {offsets = [0, 0], sizes = [8, 128], strides = [1, 1]} : vector<16x128xf32> to vector<8x128xf32>
    %23 = vector.extract_strided_slice %21 {offsets = [8, 0], sizes = [8, 128], strides = [1, 1]} : vector<16x128xf32> to vector<8x128xf32>
    %24 = arith.addf %22, %23 : vector<8x128xf32>
    %c0_15 = arith.constant 0 : index
    %c0_16 = arith.constant 0 : index
    %25 = vector.load %arg3[%c0_15, %c0_16] : memref<8x128xf32, #tpu.memory_space<vmem>>, vector<8x128xf32>
    %c384 = arith.constant 384 : index
    %c0_17 = arith.constant 0 : index
    %26 = vector.load %arg4[%c384, %c0_17] : memref<768x128xf32, #tpu.memory_space<vmem>>, vector<128x128xf32>
    %cst_18 = arith.constant dense<0.000000e+00> : vector<8x128xf32>
    %27 = tpu.matmul %24, %26, %cst_18 {dimension_numbers = #tpu.dot_dimension_numbers<[1], [0], [0], [1], [0, 0, 1, 1], [], []>} : vector<8x128xf32>, vector<128x128xf32>, vector<8x128xf32> -> vector<8x128xf32>
    %28 = arith.addf %27, %25 : vector<8x128xf32>
    %c3 = arith.constant 3 : index
    %c0_19 = arith.constant 0 : index
    %29 = vector.load %arg5[%c3, %c0_19] : memref<8x128xf32, #tpu.memory_space<vmem>>, vector<1x128xf32>
    %30 = vector.broadcast %29 : vector<1x128xf32> to vector<8x128xf32>
    %31 = arith.addf %28, %30 : vector<8x128xf32>
    %cst_20 = arith.constant 0.000000e+00 : f32
    %32 = vector.broadcast %cst_20 : f32 to vector<8x128xf32>
    %33 = arith.maximumf %31, %32 : vector<8x128xf32>
    %c512 = arith.constant 512 : index
    %c0_21 = arith.constant 0 : index
    %34 = vector.load %arg4[%c512, %c0_21] : memref<768x128xf32, #tpu.memory_space<vmem>>, vector<128x128xf32>
    %cst_22 = arith.constant dense<0.000000e+00> : vector<8x128xf32>
    %35 = tpu.matmul %33, %34, %cst_22 {dimension_numbers = #tpu.dot_dimension_numbers<[1], [0], [0], [1], [0, 0, 1, 1], [], []>} : vector<8x128xf32>, vector<128x128xf32>, vector<8x128xf32> -> vector<8x128xf32>
    %c4 = arith.constant 4 : index
    %c0_23 = arith.constant 0 : index
    %36 = vector.load %arg5[%c4, %c0_23] : memref<8x128xf32, #tpu.memory_space<vmem>>, vector<1x128xf32>
    %37 = vector.broadcast %36 : vector<1x128xf32> to vector<8x128xf32>
    %38 = arith.addf %35, %37 : vector<8x128xf32>
    %cst_24 = arith.constant 0.000000e+00 : f32
    %39 = vector.broadcast %cst_24 : f32 to vector<8x128xf32>
    %40 = arith.maximumf %38, %39 : vector<8x128xf32>
    %c640 = arith.constant 640 : index
    %c0_25 = arith.constant 0 : index
    %41 = vector.load %arg4[%c640, %c0_25] : memref<768x128xf32, #tpu.memory_space<vmem>>, vector<128x128xf32>
    %cst_26 = arith.constant dense<0.000000e+00> : vector<8x128xf32>
    %42 = tpu.matmul %40, %41, %cst_26 {dimension_numbers = #tpu.dot_dimension_numbers<[1], [0], [0], [1], [0, 0, 1, 1], [], []>} : vector<8x128xf32>, vector<128x128xf32>, vector<8x128xf32> -> vector<8x128xf32>
    %c5 = arith.constant 5 : index
    %c0_27 = arith.constant 0 : index
    %43 = vector.load %arg5[%c5, %c0_27] : memref<8x128xf32, #tpu.memory_space<vmem>>, vector<1x128xf32>
    %44 = vector.broadcast %43 : vector<1x128xf32> to vector<8x128xf32>
    %45 = arith.addf %42, %44 : vector<8x128xf32>
    %c0_28 = arith.constant 0 : index
    %c0_29 = arith.constant 0 : index
    %46 = vector.load %arg6[%c0_28, %c0_29] : memref<8x128xf32, #tpu.memory_space<vmem>>, vector<8x128xf32>
    tpu.vector_store %arg6[%c0_28, %c0_29], %45 {strides = array<i32>} : memref<8x128xf32, #tpu.memory_space<vmem>>, vector<8x128xf32>,
    return
  }
  func.func @transform_0(%arg0: i32) -> (i32, i32) {
    %c0_i32 = arith.constant 0 : i32
    %c0_i32_0 = arith.constant 0 : i32
    return %arg0, %c0_i32 : i32, i32
  }
  func.func @transform_1(%arg0: i32) -> (i32, i32) {
    %c0_i32 = arith.constant 0 : i32
    %c0_i32_0 = arith.constant 0 : i32
    return %arg0, %c0_i32 : i32, i32
  }
  func.func @transform_2(%arg0: i32) -> (i32, i32) {
    %c0_i32 = arith.constant 0 : i32
    %c0_i32_0 = arith.constant 0 : i32
    return %arg0, %c0_i32 : i32, i32
  }
  func.func @transform_3(%arg0: i32) -> (i32, i32) {
    %c0_i32 = arith.constant 0 : i32
    %c0_i32_0 = arith.constant 0 : i32
    %c0_i32_1 = arith.constant 0 : i32
    return %c0_i32, %c0_i32_0 : i32, i32
  }
  func.func @transform_4(%arg0: i32) -> (i32, i32) {
    %c0_i32 = arith.constant 0 : i32
    %c0_i32_0 = arith.constant 0 : i32
    %c0_i32_1 = arith.constant 0 : i32
    return %c0_i32, %c0_i32_0 : i32, i32
  }
  func.func @transform_5(%arg0: i32) -> (i32, i32) {
    %c0_i32 = arith.constant 0 : i32
    %c0_i32_0 = arith.constant 0 : i32
    return %arg0, %c0_i32 : i32, i32
  }
}

</mosaic_0001>

<bundles_post_ra>
// kernel: tpu_custom_call.1
= control target key start
LH: loop header
LB: loop body
LE: loop exit
PB: predicated region body
PF: predicated region fallthrough
CT: control target
= control target key end

     0   :  { %10 = vsyncpa [#allocation3], 0  ;;  %s1429_s0 = inlined_call_operand.hbm [shape: f32[8,128], index: 0, kind: input, shape index: {}]   ;;  %s1430_s1 = inlined_call_operand.hbm [shape: f32[8,128], index: 1, kind: input, shape index: {}]   ;;  %s1431_s2 = inlined_call_operand.hbm [shape: f32[8,128], index: 2, kind: input, shape index: {}]   ;;  %s1432_s3 = inlined_call_operand.hbm [shape: f32[768,128], index: 3, kind: input, shape index: {}]   ;;  %s1433_s4 = inlined_call_operand.vmem [shape: f32[8,128], index: 4, kind: input, shape index: {}]   ;;  %s1434_s5 = inlined_call_operand.hbm [shape: f32[8,128], index: 5, kind: output, shape index: {}]  }
   0x1   :  { %11 = vsyncpa [#allocation6], 0 }
   0x2   :  { %12 = vsyncpa [#allocation9], 0 }
   0x3   :  { %13 = vsyncpa [#allocation4], 0  ;;  %s1277_s18 = smov [#allocation5]   ;;  %s1278_s20 = smov [#allocation2]  }
   0x4   :  { %s30_s19 = sshll.u32 %s1277_s18, 4  ;;  %s20_s21 = sshll.u32 %s1278_s20, 4  ;;  %s31_s19 = int_to_ptr.vmem [resolvable:$true] %s30_s19  ;;  %s21_s21 = int_to_ptr.vmem [resolvable:$true] %s20_s21 }
   0x5   :  { %s1159_s24 = scalar_lea.hbm %s1430_s1, 128 }
   0x6   :  { %p1160_p0 = scmp.ne.s32.totalorder %s1430_s1, %s1159_s24  ;;  %p1163_p1 = scmp.lt.u32.totalorder %s1159_s24, %s1430_s1 }
   0x8   :  { %p1165_p2 = pnand %p1163_p1, %p1160_p0 }
   0xa   :  { %1168 = shalt.err (!%p1165_p2)
}
   0xb   :  { %s1169_s29 = scalar_lea.vmem %s31_s19, 128  ;;  %p1174_p4 = scmp.lt.s32.totalorder %s31_s19, %s31_s19 }
   0xc   :  { %p1170_p3 = scmp.ne.s32.totalorder %s31_s19, %s1169_s29  ;;  %p1175_p5 = scmp.lt.s32.totalorder %s1169_s29, %s1169_s29 }
   0xe   :  { %p1176_p6 = por %p1175_p5, %p1174_p4 }
  0x10   :  { %p1177_p7 = pnand %p1176_p6, %p1170_p3 }
  0x12   :  { %1180 = shalt.err (!%p1177_p7)
}
  0x13   :  { %33 = dma.hbm_to_vmem [thread:$0]  %s1430_s1, 128, %s31_s19, [#allocation6]  }
  0x14   :  { %s1181_s9 = scalar_lea.hbm %s1429_s0, 128 }
  0x15   :  { %p1182_p8 = scmp.ne.s32.totalorder %s1429_s0, %s1181_s9  ;;  %p1185_p9 = scmp.lt.u32.totalorder %s1181_s9, %s1429_s0 }
  0x17   :  { %p1187_p10 = pnand %p1185_p9, %p1182_p8 }
  0x19   :  { %1190 = shalt.err (!%p1187_p10)
}
  0x1a   :  { %s1191_s14 = scalar_lea.vmem %s21_s21, 128  ;;  %p1196_p12 = scmp.lt.s32.totalorder %s21_s21, %s21_s21 }
  0x1b   :  { %p1192_p11 = scmp.ne.s32.totalorder %s21_s21, %s1191_s14  ;;  %p1197_p13 = scmp.lt.s32.totalorder %s1191_s14, %s1191_s14 }
  0x1d   :  { %p1198_p0 = por %p1197_p13, %p1196_p12 }
  0x1f   :  { %p1199_p1 = pnand %p1198_p0, %p1192_p11 }
  0x21   :  { %1202 = shalt.err (!%p1199_p1)
}
  0x22   :  { %23 = dma.hbm_to_vmem [thread:$0]  %s1429_s0, 128, %s21_s21, [#allocation3]  }
  0x23   :  { %s1279_s16 = smov [#allocation7]   ;;  %s1280_s18 = smov [#allocation8]  }
  0x24   :  { %s40_s17 = sshll.u32 %s1279_s16, 4  ;;  %s49_s19 = sshll.u32 %s1280_s18, 4  ;;  %s41_s17 = int_to_ptr.vmem [resolvable:$true] %s40_s17  ;;  %s1341_s19 = int_to_ptr.vmem [resolvable:$true] %s49_s19 }
  0x25   :  { %s1203_s23 = scalar_lea.hbm %s1431_s2, 128 }
  0x26   :  { %p1204_p2 = scmp.ne.s32.totalorder %s1431_s2, %s1203_s23  ;;  %p1207_p3 = scmp.lt.u32.totalorder %s1203_s23, %s1431_s2 }
  0x28   :  { %p1209_p4 = pnand %p1207_p3, %p1204_p2 }
  0x2a   :  { %1212 = shalt.err (!%p1209_p4)
}
  0x2b   :  { %s1213_s0 = scalar_lea.vmem %s41_s17, 128  ;;  %p1218_p6 = scmp.lt.s32.totalorder %s41_s17, %s41_s17 }
  0x2c   :  { %p1214_p5 = scmp.ne.s32.totalorder %s41_s17, %s1213_s0  ;;  %p1219_p7 = scmp.lt.s32.totalorder %s1213_s0, %s1213_s0 }
  0x2e   :  { %p1220_p8 = por %p1219_p7, %p1218_p6 }
  0x30   :  { %p1221_p9 = pnand %p1220_p8, %p1214_p5 }
  0x32   :  { %1224 = shalt.err (!%p1221_p9)
}
  0x33   :  { %43 = dma.hbm_to_vmem [thread:$0]  %s1431_s2, 128, %s41_s17, [#allocation6]  }
  0x34   :  { %s1225_s6 = scalar_lea.hbm %s1432_s3, 12288 }
  0x35   :  { %p1226_p10 = scmp.ne.s32.totalorder %s1432_s3, %s1225_s6  ;;  %p1229_p11 = scmp.lt.u32.totalorder %s1225_s6, %s1432_s3 }
  0x37   :  { %p1231_p12 = pnand %p1229_p11, %p1226_p10 }
  0x39   :  { %1234 = shalt.err (!%p1231_p12)
}
  0x3a   :  { %s1235_s11 = scalar_lea.vmem %s1341_s19, 12288  ;;  %p1240_p0 = scmp.lt.s32.totalorder %s1341_s19, %s1341_s19 }
  0x3b   :  { %p1236_p13 = scmp.ne.s32.totalorder %s1341_s19, %s1235_s11  ;;  %p1241_p1 = scmp.lt.s32.totalorder %s1235_s11, %s1235_s11 }
  0x3d   :  { %p1242_p2 = por %p1241_p1, %p1240_p0 }
  0x3f   :  { %p1243_p3 = pnand %p1242_p2, %p1236_p13 }
  0x41   :  { %1246 = shalt.err (!%p1243_p3)
}
  0x42   :  { %s1281_s2 = smov 128   ;;  %s1282_s12 = smov 8  }
  0x43   :  { %55 = dma.hbm_to_vmem [thread:$0]  %s1432_s3, 12288, %s1341_s19, [#allocation9], %s1281_s2, %s1281_s2, %s1282_s12  }
  0x44   :  { %1269 = dma.done.wait [#allocation3], 128  }
  0x45   :  { %1270 = vsyncadd [#allocation3], 4294967168 }
  0x46   :  { %1271 = dma.done.wait [#allocation6], 256  }
  0x47   :  { %1272 = vsyncadd [#allocation6], 4294967040 }
  0x48   :  { %1273 = dma.done.wait [#allocation9], 12288  }
  0x49   :  { %1274 = vsyncadd [#allocation9], 4294955008  ;;  %v72_v0 = vld [vmem:[#allocation8] sm:$0xff]  ;;  %v73_v1 = vld [vmem:[#allocation8 + $0x8] sm:$0xff]  ;;  %vm1284_vm0 = vmmov 0   ;;  %s1286_s26 = smov [#allocation10]  }
  0x4a   :  { %v74_v2 = vld [vmem:[#allocation8 + $0x10] sm:$0xff]  ;;  %v981_v3 = vpack.c.bf16 %v73_v1, %v72_v0  ;;  %v75_v4 = vld [vmem:[#allocation8 + $0x18] sm:$0xff]  ;;  %v76_v6 = vld [vmem:[#allocation8 + $0x20] sm:$0xff]  ;;  %s649_s27 = sshll.u32 %s1286_s26, 4  ;;  %s650_s27 = int_to_ptr.vmem [resolvable:$true] %s649_s27 }
  0x4b   :  { %v985_v5 = vpack.c.bf16 %v75_v4, %v74_v2  ;;  %v77_v7 = vld [vmem:[#allocation8 + $0x28] sm:$0xff]  ;;  %v78_v9 = vld [vmem:[#allocation8 + $0x30] sm:$0xff]  ;;  %v79_v10 = vld [vmem:[#allocation8 + $0x38] sm:$0xff]  ;;  %s1247_s0 = scalar_lea.vmem %s650_s27, 128  ;;  %p1252_p5 = scmp.lt.s32.totalorder %s650_s27, %s650_s27 }
  0x4c   :  { %982 = vmatprep.subr.bf16.mxu0 %v981_v3  ;;  %v989_v8 = vpack.c.bf16 %v77_v7, %v76_v6  ;;  %v70_v11 = vld [vmem:[#allocation2] sm:$0xff]  ;;  %v170_v12 = vld [vmem:[#allocation8 + $0x80] sm:$0xff]  ;;  %v172_v14 = vld [vmem:[#allocation8 + $0x90] sm:$0xff]  ;;  %v993_v20 = vpack.c.bf16 %v79_v10, %v78_v9  ;;  %p1248_p4 = scmp.ne.s32.totalorder %s650_s27, %s1247_s0  ;;  %p1253_p6 = scmp.lt.s32.totalorder %s1247_s0, %s1247_s0 }
  0x4d   :  { %984 = vmatpush3.bf16.msra.mxu0 %v981_v3  ;;  %803 = vmatprep.mubr.f32.mxu0 %v70_v11  ;;  %v171_v13 = vld [vmem:[#allocation8 + $0x88] sm:$0xff]  ;;  %v173_v16 = vld [vmem:[#allocation8 + $0x98] sm:$0xff]  ;;  %v174_v18 = vld [vmem:[#allocation8 + $0xa0] sm:$0xff] }
  0x4e   :  { %986 = vmatprep.subr.bf16.mxu0 %v985_v5  ;;  %v1013_v15 = vpack.c.bf16 %v171_v13, %v170_v12  ;;  %v1017_v17 = vpack.c.bf16 %v173_v16, %v172_v14  ;;  %v175_v19 = vld [vmem:[#allocation8 + $0xa8] sm:$0xff]  ;;  %v80_v21 = vld [vmem:[#allocation8 + $0x40] sm:$0xff]  ;;  %v176_v24 = vld [vmem:[#allocation8 + $0xb0] sm:$0xff]  ;;  %p1254_p7 = por %p1253_p6, %p1252_p5 }
  0x4f   :  { %v81_v22 = vld [vmem:[#allocation8 + $0x48] sm:$0xff]  ;;  %v1021_v23 = vpack.c.bf16 %v175_v19, %v174_v18  ;;  %v177_v25 = vld [vmem:[#allocation8 + $0xb8] sm:$0xff]  ;;  %v82_v27 = vld [vmem:[#allocation8 + $0x50] sm:$0xff] }
  0x50   :  { %1014 = vmatprep.subr.bf16.mxu1 %v1013_v15  ;;  %v997_v26 = vpack.c.bf16 %v81_v22, %v80_v21  ;;  %v83_v28 = vld [vmem:[#allocation8 + $0x58] sm:$0xff]  ;;  %v1025_v29 = vpack.c.bf16 %v177_v25, %v176_v24  ;;  %v178_v30 = vld [vmem:[#allocation8 + $0xc0] sm:$0xff]  ;;  %v179_v31 = vld [vmem:[#allocation8 + $0xc8] sm:$0xff]  ;;  %p1255_p8 = pnand %p1254_p7, %p1248_p4 }
  0x51   :  { %988 = vmatpush3.bf16.msra.mxu0 %v985_v5  ;;  %1016 = vmatpush3.bf16.msra.mxu1 %v1013_v15  ;;  %v1001_v32 = vpack.c.bf16 %v83_v28, %v82_v27  ;;  %v84_v33 = vld [vmem:[#allocation8 + $0x60] sm:$0xff]  ;;  %v85_v34 = vld [vmem:[#allocation8 + $0x68] sm:$0xff]  ;;  %v1029_v35 = vpack.c.bf16 %v179_v31, %v178_v30  ;;  %v180_v36 = vld [vmem:[#allocation8 + $0xd0] sm:$0xff] }
  0x52   :  { %990 = vmatprep.subr.bf16.mxu0 %v989_v8  ;;  %1018 = vmatprep.subr.bf16.mxu1 %v1017_v17  ;;  %v181_v37 = vld [vmem:[#allocation8 + $0xd8] sm:$0xff]  ;;  %v1005_v38 = vpack.c.bf16 %v85_v34, %v84_v33  ;;  %v86_v39 = vld [vmem:[#allocation8 + $0x70] sm:$0xff]  ;;  %v182_v42 = vld [vmem:[#allocation8 + $0xe0] sm:$0xff] }
  0x53   :  { %v87_v40 = vld [vmem:[#allocation8 + $0x78] sm:$0xff]  ;;  %v1033_v41 = vpack.c.bf16 %v181_v37, %v180_v36  ;;  %v183_v43 = vld [vmem:[#allocation8 + $0xe8] sm:$0xff]  ;;  %v71_v46 = vld [vmem:[#allocation5] sm:$0xff] }
  0x54   :  { %v1009_v44 = vpack.c.bf16 %v87_v40, %v86_v39  ;;  %v1037_v45 = vpack.c.bf16 %v183_v43, %v182_v42  ;;  %v184_v47 = vld [vmem:[#allocation8 + $0xf0] sm:$0xff]  ;;  %v185_v48 = vld [vmem:[#allocation8 + $0xf8] sm:$0xff]  ;;  %v268_v50 = vld [vmem:[#allocation8 + $0x100] sm:$0xff] }
  0x55   :  { %992 = vmatpush3.bf16.msra.mxu0 %v989_v8  ;;  %1020 = vmatpush3.bf16.msra.mxu1 %v1017_v17  ;;  %v1041_v49 = vpack.c.bf16 %v185_v48, %v184_v47  ;;  %v269_v51 = vld [vmem:[#allocation8 + $0x108] sm:$0xff]  ;;  %v270_v52 = vld [vmem:[#allocation8 + $0x110] sm:$0xff]  ;;  %v271_v54 = vld [vmem:[#allocation8 + $0x118] sm:$0xff] }
  0x56   :  { %994 = vmatprep.subr.bf16.mxu0 %v993_v20  ;;  %1022 = vmatprep.subr.bf16.mxu1 %v1021_v23  ;;  %v1045_v53 = vpack.c.bf16 %v269_v51, %v268_v50  ;;  %v1049_v55 = vpack.c.bf16 %v271_v54, %v270_v52  ;;  %v272_v56 = vld [vmem:[#allocation8 + $0x120] sm:$0xff]  ;;  %v273_v57 = vld [vmem:[#allocation8 + $0x128] sm:$0xff]  ;;  %v274_v59 = vld [vmem:[#allocation8 + $0x130] sm:$0xff] }
  0x57   :  { %v1053_v58 = vpack.c.bf16 %v273_v57, %v272_v56  ;;  %v275_v60 = vld [vmem:[#allocation8 + $0x138] sm:$0xff]  ;;  %v276_v62 = vld [vmem:[#allocation8 + $0x140] sm:$0xff]  ;;  %v277_v63 = vld [vmem:[#allocation8 + $0x148] sm:$0xff] }
  0x58   :  { %v1057_v61 = vpack.c.bf16 %v275_v60, %v274_v59  ;;  %v1061_v0 = vpack.c.bf16 %v277_v63, %v276_v62  ;;  %v278_v1 = vld [vmem:[#allocation8 + $0x150] sm:$0xff]  ;;  %v279_v2 = vld [vmem:[#allocation8 + $0x158] sm:$0xff]  ;;  %v280_v4 = vld [vmem:[#allocation8 + $0x160] sm:$0xff] }
  0x59   :  { %996 = vmatpush3.bf16.msra.mxu0 %v993_v20  ;;  %1024 = vmatpush3.bf16.msra.mxu1 %v1021_v23  ;;  %v1065_v3 = vpack.c.bf16 %v279_v2, %v278_v1  ;;  %v281_v5 = vld [vmem:[#allocation8 + $0x168] sm:$0xff]  ;;  %v282_v14 = vld [vmem:[#allocation8 + $0x170] sm:$0xff]  ;;  %v283_v15 = vld [vmem:[#allocation8 + $0x178] sm:$0xff]  ;;  %v1283_v20 = vmov 0.0|0.0  }
  0x5a   :  { %998 = vmatprep.subr.bf16.mxu0 %v997_v26  ;;  %1026 = vmatprep.subr.bf16.mxu1 %v1025_v29  ;;  %v1069_v6 = vpack.c.bf16 %v281_v5, %v280_v4  ;;  %v660_v7 = vld [vmem:[%s1433_s4] ss:$0 sm:$0xff]  ;;  %v1073_v16 = vpack.c.bf16 %v283_v15, %v282_v14  ;;  %v366_v17 = vld [vmem:[#allocation8 + $0x180] sm:$0xff]  ;;  %v368_v19 = vld [vmem:[#allocation8 + $0x190] sm:$0xff] }
  0x5b   :  { %v367_v18 = vld [vmem:[#allocation8 + $0x188] sm:$0xff]  ;;  %v369_v22 = vld [vmem:[#allocation8 + $0x198] sm:$0xff]  ;;  %v370_v24 = vld [vmem:[#allocation8 + $0x1a0] sm:$0xff] }
  0x5c   :  { %v1078_v21 = vpack.c.bf16 %v367_v18, %v366_v17  ;;  %v1081_v23 = vpack.c.bf16 %v369_v22, %v368_v19  ;;  %v371_v25 = vld [vmem:[#allocation8 + $0x1a8] sm:$0xff]  ;;  %v372_v27 = vld [vmem:[#allocation8 + $0x1b0] sm:$0xff]  ;;  %v373_v28 = vld [vmem:[#allocation8 + $0x1b8] sm:$0xff] }
  0x5d   :  { %1000 = vmatpush3.bf16.msra.mxu0 %v997_v26  ;;  %1028 = vmatpush3.bf16.msra.mxu1 %v1025_v29  ;;  %v1084_v26 = vpack.c.bf16 %v371_v25, %v370_v24  ;;  %v1087_v29 = vpack.c.bf16 %v373_v28, %v372_v27  ;;  %v374_v30 = vld [vmem:[#allocation8 + $0x1c0] sm:$0xff]  ;;  %v375_v31 = vld [vmem:[#allocation8 + $0x1c8] sm:$0xff]  ;;  %v376_v33 = vld [vmem:[#allocation8 + $0x1d0] sm:$0xff] }
  0x5e   :  { %1002 = vmatprep.subr.bf16.mxu0 %v1001_v32  ;;  %1030 = vmatprep.subr.bf16.mxu1 %v1029_v35  ;;  %v377_v34 = vld [vmem:[#allocation8 + $0x1d8] sm:$0xff]  ;;  %v378_v36 = vld [vmem:[#allocation8 + $0x1e0] sm:$0xff]  ;;  %v379_v37 = vld [vmem:[#allocation8 + $0x1e8] sm:$0xff] }
  0x5f   :  { %v661_v39 = vld [vmem:[%s1433_s4 + $0x1] ss:$0 sm:$0xff]  ;;  %v381_v47 = vld [vmem:[#allocation8 + $0x1f8] sm:$0xff]  ;;  %v459_v50 = vld [vmem:[#allocation8 + $0x200] sm:$0xff] }
  0x60   :  { %v460_v51 = vld [vmem:[#allocation8 + $0x208] sm:$0xff]  ;;  %v461_v52 = vld [vmem:[#allocation8 + $0x210] sm:$0xff]  ;;  %v462_v54 = vld [vmem:[#allocation8 + $0x218] sm:$0xff] }
  0x61   :  { %1004 = vmatpush3.bf16.msra.mxu0 %v1001_v32  ;;  %1032 = vmatpush3.bf16.msra.mxu1 %v1029_v35  ;;  %v1090_v32 = vpack.c.bf16 %v375_v31, %v374_v30  ;;  %v1093_v35 = vpack.c.bf16 %v377_v34, %v376_v33  ;;  %v463_v56 = vld [vmem:[#allocation8 + $0x220] sm:$0xff]  ;;  %v464_v57 = vld [vmem:[#allocation8 + $0x228] sm:$0xff]  ;;  %v465_v59 = vld [vmem:[#allocation8 + $0x230] sm:$0xff] }
  0x62   :  { %1006 = vmatprep.subr.bf16.mxu0 %v1005_v38  ;;  %1034 = vmatprep.subr.bf16.mxu1 %v1033_v41  ;;  %v466_v60 = vld [vmem:[#allocation8 + $0x238] sm:$0xff]  ;;  %v467_v62 = vld [vmem:[#allocation8 + $0x240] sm:$0xff]  ;;  %v468_v63 = vld [vmem:[#allocation8 + $0x248] sm:$0xff] }
  0x63   :  { %v469_v1 = vld [vmem:[#allocation8 + $0x250] sm:$0xff]  ;;  %v470_v2 = vld [vmem:[#allocation8 + $0x258] sm:$0xff]  ;;  %v662_v4 = vld [vmem:[%s1433_s4 + $0x2] ss:$0 sm:$0xff] }
  0x64   :  { %v474_v14 = vld [vmem:[#allocation8 + $0x278] sm:$0xff]  ;;  %v552_v17 = vld [vmem:[#allocation8 + $0x288] sm:$0xff]  ;;  %v553_v18 = vld [vmem:[#allocation8 + $0x290] sm:$0xff] }
  0x65   :  { %1008 = vmatpush3.bf16.msra.mxu0 %v1005_v38  ;;  %1036 = vmatpush3.bf16.msra.mxu1 %v1033_v41  ;;  %v1096_v38 = vpack.c.bf16 %v379_v37, %v378_v36  ;;  %v556_v24 = vld [vmem:[#allocation8 + $0x2a8] sm:$0xff]  ;;  %v558_v27 = vld [vmem:[#allocation8 + $0x2b8] sm:$0xff] }
  0x66   :  { %1010 = vmatprep.subr.bf16.mxu0 %v1009_v44  ;;  %1038 = vmatprep.subr.bf16.mxu1 %v1037_v45  ;;  %v560_v30 = vld [vmem:[#allocation8 + $0x2c8] sm:$0xff]  ;;  %v562_v33 = vld [vmem:[#allocation8 + $0x2d8] sm:$0xff] }
  0x67   :  { %v564_v36 = vld [vmem:[#allocation8 + $0x2e8] sm:$0xff] }
  0x69   :  { %1012 = vmatpush3.bf16.msra.mxu0 %v1009_v44  ;;  %1040 = vmatpush3.bf16.msra.mxu1 %v1037_v45 }
  0x6a   :  { %1042 = vmatprep.subr.bf16.mxu1 %v1041_v49  ;;  %1046 = vmatprep.subr.bf16.mxu0 %v1045_v53 }
  0x6c   :  { %804 = vmatmul.mubr.f32.vlgmr.msra.gmra.mrb[0].mxu0 %v71_v46  ;;  %v380_v46 = vld [vmem:[#allocation8 + $0x1f0] sm:$0xff] }
  0x6d   :  { %1044 = vmatpush3.bf16.msra.mxu1 %v1041_v49  ;;  %1048 = vmatpush3.bf16.msra.mxu0 %v1045_v53  ;;  %v1099_v48 = vpack.c.bf16 %v381_v47, %v380_v46  ;;  %v1285_v49 = vmov 0.0   ;;  %v1102_v53 = vpack.c.bf16 %v460_v51, %v459_v50  ;;  %v566_v46 = vld [vmem:[#allocation8 + $0x2f8] sm:$0xff] }
  0x6e   :  { %1050 = vmatprep.subr.bf16.mxu0 %v1049_v55  ;;  %1077 = vmatprep.subr.bf16.mxu1 %v1283_v20 }
  0x71   :  { %1052 = vmatpush3.bf16.msra.mxu0 %v1049_v55  ;;  %v1105_v55 = vpack.c.bf16 %v462_v54, %v461_v52  ;;  %v665_v52 = vld [vmem:[%s1433_s4 + $0x5] ss:$0 sm:$0xff] }
  0x72   :  { %1054 = vmatprep.subr.bf16.mxu0 %v1053_v58 }
  0x75   :  { %1056 = vmatpush3.bf16.msra.mxu0 %v1053_v58  ;;  %v1108_v58 = vpack.c.bf16 %v464_v57, %v463_v56 }
  0x76   :  { %1058 = vmatprep.subr.bf16.mxu0 %v1057_v61 }
  0x79   :  { %1060 = vmatpush3.bf16.msra.mxu0 %v1057_v61  ;;  %v1111_v61 = vpack.c.bf16 %v466_v60, %v465_v59 }
  0x7a   :  { %1062 = vmatprep.subr.bf16.mxu0 %v1061_v0 }
  0x7d   :  { %1064 = vmatpush3.bf16.msra.mxu0 %v1061_v0  ;;  %v1114_v0 = vpack.c.bf16 %v468_v63, %v467_v62 }
  0x7e   :  { %1066 = vmatprep.subr.bf16.mxu0 %v1065_v3 }
  0x81   :  { %1068 = vmatpush3.bf16.msra.mxu0 %v1065_v3  ;;  %v1117_v3 = vpack.c.bf16 %v470_v2, %v469_v1 }
  0x82   :  { %1070 = vmatprep.subr.bf16.mxu0 %v1069_v6 }
  0x85   :  { %1072 = vmatpush3.bf16.msra.mxu0 %v1069_v6 }
  0x86   :  { %1074 = vmatprep.subr.bf16.mxu0 %v1073_v16 }
  0x89   :  { %1076 = vmatpush3.bf16.msra.mxu0 %v1073_v16  ;;  %v551_v16 = vld [vmem:[#allocation8 + $0x280] sm:$0xff] }
  0x8a   :  { %1101 = vmatprep.subr.bf16.mxu0 %v1283_v20  ;;  %v1126_v19 = vpack.c.bf16 %v552_v17, %v551_v16 }
 0x13f   :  { %v805_v8 = vpop.f32.mrb[0].mxu0 }
 0x140   :  { %v165_v9 = vadd.f32 %v805_v8, %v660_v7  ;;  %v159_v10 = vpop.f32.mrb[1].mxu0 }
 0x141   :  { %v160_v11 = vadd.f32 %v660_v7, %v159_v10  ;;  %v471_v10 = vld [vmem:[#allocation8 + $0x260] sm:$0xff] }
 0x142   :  { %v169_v13 = vmax.f32 %v165_v9, 0.0 }
 0x143   :  { %v168_v12 = vmax.f32 %v160_v11, 0.0  ;;  %v472_v11 = vld [vmem:[#allocation8 + $0x268] sm:$0xff] }
 0x145   :  { %838 = vmatprep.mubr.f32.mxu1 %v168_v12  ;;  %v1120_v12 = vpack.c.bf16 %v472_v11, %v471_v10 }
 0x146   :  { %839 = vmatmul.mubr.f32.vlgmr.msra.gmra.mrb[0].mxu1 %v169_v13  ;;  %v473_v13 = vld [vmem:[#allocation8 + $0x270] sm:$0xff] }
 0x147   :  { %1079 = vmatpush3.bf16.msra.mxu1 %v1078_v21  ;;  %908 = vmatprep.mubr.msk.f32.mxu1 %vm1284_vm0, %v1285_v49  ;;  %v1123_v15 = vpack.c.bf16 %v474_v14, %v473_v13  ;;  %v554_v21 = vld [vmem:[#allocation8 + $0x298] sm:$0xff] }
 0x148   :  { %1080 = vmatprep.subr.bf16.mxu1 %v1283_v20  ;;  %v1129_v22 = vpack.c.bf16 %v554_v21, %v553_v18 }
 0x14b   :  { %1082 = vmatpush3.bf16.msra.mxu1 %v1081_v23  ;;  %v555_v23 = vld [vmem:[#allocation8 + $0x2a0] sm:$0xff] }
 0x14c   :  { %1083 = vmatprep.subr.bf16.mxu1 %v1283_v20  ;;  %v1132_v25 = vpack.c.bf16 %v556_v24, %v555_v23 }
 0x14f   :  { %1085 = vmatpush3.bf16.msra.mxu1 %v1084_v26  ;;  %v557_v26 = vld [vmem:[#allocation8 + $0x2b0] sm:$0xff] }
 0x150   :  { %1086 = vmatprep.subr.bf16.mxu1 %v1283_v20  ;;  %v1135_v28 = vpack.c.bf16 %v558_v27, %v557_v26 }
 0x153   :  { %1088 = vmatpush3.bf16.msra.mxu1 %v1087_v29  ;;  %v559_v29 = vld [vmem:[#allocation8 + $0x2c0] sm:$0xff] }
 0x154   :  { %1089 = vmatprep.subr.bf16.mxu1 %v1283_v20  ;;  %v1138_v31 = vpack.c.bf16 %v560_v30, %v559_v29 }
 0x157   :  { %1091 = vmatpush3.bf16.msra.mxu1 %v1090_v32  ;;  %v561_v32 = vld [vmem:[#allocation8 + $0x2d0] sm:$0xff] }
 0x158   :  { %1092 = vmatprep.subr.bf16.mxu1 %v1283_v20  ;;  %v1141_v34 = vpack.c.bf16 %v562_v33, %v561_v32 }
 0x15b   :  { %1094 = vmatpush3.bf16.msra.mxu1 %v1093_v35  ;;  %v563_v35 = vld [vmem:[#allocation8 + $0x2e0] sm:$0xff] }
 0x15c   :  { %1095 = vmatprep.subr.bf16.mxu1 %v1283_v20  ;;  %v1144_v37 = vpack.c.bf16 %v564_v36, %v563_v35 }
 0x15f   :  { %1097 = vmatpush3.bf16.msra.mxu1 %v1096_v38  ;;  %v365_v38 = vld [vmem:[#allocation7] sm:$0xff] }
 0x160   :  { %1098 = vmatprep.subr.bf16.mxu1 %v1283_v20 }
 0x163   :  { %1100 = vmatpush3.bf16.msra.mxu1 %v1099_v48  ;;  %v664_v48 = vld [vmem:[%s1433_s4 + $0x4] ss:$0 sm:$0xff] }
 0x164   :  { %1125 = vmatprep.subr.bf16.mxu1 %v1283_v20 }
 0x219   :  { %v840_v40 = vpop.f32.mrb[0].mxu1 }
 0x21a   :  { %v263_v41 = vadd.f32 %v840_v40, %v661_v39  ;;  %v257_v42 = vpop.f32.mrb[1].mxu1  ;;  %v663_v40 = vld [vmem:[%s1433_s4 + $0x3] ss:$0 sm:$0xff] }
 0x21b   :  { %v258_v43 = vadd.f32 %v661_v39, %v257_v42 }
 0x21c   :  { %v267_v45 = vmax.f32 %v263_v41, 0.0 }
 0x21d   :  { %v266_v44 = vmax.f32 %v258_v43, 0.0 }
 0x21f   :  { %873 = vmatprep.mubr.f32.mxu0 %v266_v44 }
 0x220   :  { %874 = vmatmul.mubr.f32.vlgmr.msra.gmra.mrb[2].mxu0 %v267_v45  ;;  %v565_v45 = vld [vmem:[#allocation8 + $0x2f0] sm:$0xff] }
 0x221   :  { %943 = vmatprep.mubr.msk.f32.mxu0 %vm1284_vm0, %v1285_v49  ;;  %1103 = vmatpush3.bf16.msra.mxu0 %v1102_v53  ;;  %v1147_v47 = vpack.c.bf16 %v566_v46, %v565_v45 }
 0x222   :  { %1104 = vmatprep.subr.bf16.mxu0 %v1283_v20 }
 0x225   :  { %1106 = vmatpush3.bf16.msra.mxu0 %v1105_v55 }
 0x226   :  { %1107 = vmatprep.subr.bf16.mxu0 %v1283_v20 }
 0x229   :  { %1109 = vmatpush3.bf16.msra.mxu0 %v1108_v58 }
 0x22a   :  { %1110 = vmatprep.subr.bf16.mxu0 %v1283_v20 }
 0x22d   :  { %1112 = vmatpush3.bf16.msra.mxu0 %v1111_v61 }
 0x22e   :  { %1113 = vmatprep.subr.bf16.mxu0 %v1283_v20 }
 0x231   :  { %1115 = vmatpush3.bf16.msra.mxu0 %v1114_v0 }
 0x232   :  { %1116 = vmatprep.subr.bf16.mxu0 %v1283_v20 }
 0x235   :  { %1118 = vmatpush3.bf16.msra.mxu0 %v1117_v3 }
 0x236   :  { %1119 = vmatprep.subr.bf16.mxu0 %v1283_v20 }
 0x239   :  { %1121 = vmatpush3.bf16.msra.mxu0 %v1120_v12 }
 0x23a   :  { %1122 = vmatprep.subr.bf16.mxu0 %v1283_v20 }
 0x23d   :  { %1124 = vmatpush3.bf16.msra.mxu0 %v1123_v15 }
 0x2f3   :  { %v875_v5 = vpop.f32.mrb[2].mxu0 }
 0x2f4   :  { %v361_v6 = vadd.f32 %v875_v5, %v662_v4  ;;  %v355_v7 = vpop.f32.mrb[3].mxu0 }
 0x2f5   :  { %v356_v8 = vadd.f32 %v662_v4, %v355_v7 }
 0x2f7   :  { %v364_v9 = vadd.f32 %v361_v6, %v356_v8 }
 0x2f9   :  { %909 = vmatmul.mubr.f32.vlgmr.msra.gmra.mrb[2].mxu1 %v364_v9 }
 0x2fa   :  { %978 = vmatprep.mubr.msk.f32.mxu1 %vm1284_vm0, %v1285_v49  ;;  %1127 = vmatpush3.bf16.msra.mxu1 %v1126_v19 }
 0x2fb   :  { %1128 = vmatprep.subr.bf16.mxu1 %v1283_v20 }
 0x2fe   :  { %1130 = vmatpush3.bf16.msra.mxu1 %v1129_v22 }
 0x2ff   :  { %1131 = vmatprep.subr.bf16.mxu1 %v1283_v20 }
 0x302   :  { %1133 = vmatpush3.bf16.msra.mxu1 %v1132_v25 }
 0x303   :  { %1134 = vmatprep.subr.bf16.mxu1 %v1283_v20 }
 0x306   :  { %1136 = vmatpush3.bf16.msra.mxu1 %v1135_v28 }
 0x307   :  { %1137 = vmatprep.subr.bf16.mxu1 %v1283_v20 }
 0x30a   :  { %1139 = vmatpush3.bf16.msra.mxu1 %v1138_v31 }
 0x30b   :  { %1140 = vmatprep.subr.bf16.mxu1 %v1283_v20 }
 0x30e   :  { %1142 = vmatpush3.bf16.msra.mxu1 %v1141_v34 }
 0x30f   :  { %1143 = vmatprep.subr.bf16.mxu1 %v1283_v20 }
 0x312   :  { %1145 = vmatpush3.bf16.msra.mxu1 %v1144_v37 }
 0x313   :  { %1146 = vmatprep.subr.bf16.mxu1 %v1283_v20 }
 0x316   :  { %1148 = vmatpush3.bf16.msra.mxu1 %v1147_v47 }
 0x3cc   :  { %v448_v39 = vpop.f32.mrb[2].mxu1 }
 0x3cd   :  { %v449_v41 = vadd.f32 %v448_v39, %v365_v38  ;;  %v910_v42 = vpop.f32.mrb[3].mxu1 }
 0x3cf   :  { %v457_v43 = vadd.f32 %v663_v40, %v449_v41 }
 0x3d1   :  { %v458_v44 = vmax.f32 %v457_v43, 0.0 }
 0x3d3   :  { %944 = vmatmul.mubr.f32.vlgmr.msra.gmra.mrb[4].mxu0 %v458_v44 }
 0x4a6   :  { %v546_v20 = vpop.f32.mrb[4].mxu0 }
 0x4a7   :  { %v547_v49 = vadd.f32 %v664_v48, %v546_v20  ;;  %v945_v50 = vpop.f32.mrb[5].mxu0 }
 0x4a9   :  { %v550_v51 = vmax.f32 %v547_v49, 0.0 }
 0x4ab   :  { %979 = vmatmul.mubr.f32.vlgmr.msra.gmra.mrb[4].mxu1 %v550_v51 }
 0x57e   :  { %v638_v53 = vpop.f32.mrb[4].mxu1 }
 0x57f   :  { %v639_v54 = vadd.f32 %v665_v52, %v638_v53  ;;  %v980_v55 = vpop.f32.mrb[5].mxu1 }
 0x581   :  { %642 = vst [vmem:[#allocation10] sm:$0xff] %v639_v54 }
 0x582   :  { %1258 = shalt.err (!%p1255_p8)
}
 0x583   :  { %s1259_s29 = scalar_lea.hbm %s1434_s5, 128 }
 0x584   :  { %p1260_p9 = scmp.ne.s32.totalorder %s1434_s5, %s1259_s29  ;;  %p1263_p10 = scmp.lt.u32.totalorder %s1259_s29, %s1434_s5 }
 0x586   :  { %p1265_p11 = pnand %p1263_p10, %p1260_p9 }
 0x588   :  { %1268 = shalt.err (!%p1265_p11)
}
 0x589   :  { %652 = dma.vmem_to_hbm [thread:$0]  %s650_s27, 128, %s1434_s5, [#allocation4]  }
 0x58a   :  { %1275 = dma.done.wait [#allocation4], 128  }
 0x58b   :  { %1276 = vsyncadd [#allocation4], 4294967168 }
 0x58c   :  { %656 = vsyncpa [#allocation3], 1 }
 0x58d   :  { %657 = vsyncpa [#allocation6], 1 }
 0x58e   :  { %658 = vsyncpa [#allocation9], 1 }
 0x58f   :  { %659 = vsyncpa [#allocation4], 1 }

</bundles_post_ra>
